<compile_context>
chip_gen: v7x
topology: tpu7x:2x2x1
jax: 0.10.0
libtpu: 0.0.40
codegen_flags: <defaults>
</compile_context>

<pallas_src>
import functools

import jax
import jax.numpy as jnp
from jax.experimental import pallas as pl
from jax.experimental.pallas import tpu as pltpu


def _round_up(x, m):
    return ((x + m - 1) // m) * m


def _vmem_limit_bytes():
    """~80% of physical VMEM (leaves headroom for Mosaic-internal scratch); None if unknown."""
    try:
        info = pltpu.get_tpu_info()
        for name in ("vmem_capacity_bytes", "vmem_bytes", "vmem_size_bytes"):
            cap = getattr(info, name, None)
            if cap:
                return int(cap) * 4 // 5
    except Exception:
        pass
    return None


def _global_attention_kernel(enc_ref, h2_ref, w1t_ref, v_ref, ctx_ref, attn_ref,
                             *, s_valid, tanh_bf16, ctx_on_mxu):
    Bt, S, D = enc_ref.shape

    enc3 = enc_ref[...]                                     # (Bt, S, D)
    enc2 = enc3.reshape(Bt * S, D)                          # free relayout (S % 8 == 0)

    # W1(encoder_output): one well-filled (Bt*S, D) @ (D, D) MXU matmul, f32 accumulation.
    h1 = jnp.dot(enc2, w1t_ref[...], preferred_element_type=jnp.float32)
    # h2 already carries the W2 projection and (b1 + b2), computed once in the wrapper.
    pre = h1.reshape(Bt, S, D) + h2_ref[...][:, None, :]    # (Bt, S, D) f32

    # tanh + V projection. bf16 on v6e/v7x doubles EUP throughput and halves the
    # (Bt, S, D) intermediate; the lane reduce and softmax math stay in f32.
    if tanh_bf16:
        t = jnp.tanh(pre.astype(jnp.bfloat16))
        prod = t * v_ref[...].astype(jnp.bfloat16)
    else:
        t = jnp.tanh(pre)
        prod = t * v_ref[...].astype(jnp.float32)
    scores = jnp.sum(prod.astype(jnp.float32), axis=-1)     # (Bt, S) lane reduce
    # The V bias is a constant shift of every score; softmax over S is shift-invariant.

    # Mask sequence padding (only present when S was rounded up to a sublane multiple).
    if s_valid < S:
        col = jax.lax.broadcasted_iota(jnp.int32, (Bt, S), 1)
        scores = jnp.where(col < s_valid, scores, -1e30)

    # Softmax over the sequence axis (lanes). Exact reciprocal: denom is only (Bt, 1).
    m = jnp.max(scores, axis=-1, keepdims=True)
    e = jnp.exp(scores - m)
    denom = jnp.sum(e, axis=-1, keepdims=True)
    attn = e * pl.reciprocal(denom)                          # (Bt, S)
    attn_ref[...] = attn.astype(attn_ref.dtype)

    # context[b, :] = sum_s attn[b, s] * enc[b, s, :]
    if ctx_on_mxu:
        ctx = jnp.einsum('bqs,bsd->bqd', attn[:, None, :].astype(enc3.dtype), enc3,
                         preferred_element_type=jnp.float32)[:, 0, :]
    else:
        # VPU multiply + cross-sublane (XLU) reduce; use when the MXU is the binding slot.
        ctx = jnp.sum(attn[:, :, None] * enc3.astype(jnp.float32), axis=1)
    ctx_ref[...] = ctx.astype(ctx_ref.dtype)


def global_attention(encoder_output, decoder_h, params, *, block_b=None,
                     use_bf16=True, tanh_bf16=None, ctx_on_mxu=True):
    """encoder_output: (B, S, D), decoder_h: (B, D), params in PyTorch layout
    (W1 (D,D), b1 (D,), W2 (D,D), b2 (D,), V (1,D), bV (1,)).
    Returns (context (B, D) f32, attention_weights (B, S, 1) f32).

    use_bf16:  bf16 encoder / W1 / V operands in HBM and on the MXU (f32 accumulation).
    tanh_bf16: bf16 tanh + V-multiply chain; defaults to use_bf16. Set both to False
               on v5e (its VPU/EUP have no native bf16)."""
    B, S, D = encoder_output.shape
    w1, b1, w2, b2, v, bv = params
    del bv  # constant score shift; cancels under the softmax over the sequence axis

    if tanh_bf16 is None:
        tanh_bf16 = use_bf16
    compute_dtype = jnp.bfloat16 if use_bf16 else jnp.float32

    # Hoisted decoder projection: one tiny XLA matmul keeps W2 out of VMEM entirely and
    # removes a low-occupancy (M <= block_b) MXU matmul from every grid step.
    h2 = (decoder_h.astype(jnp.float32) @ w2.T.astype(jnp.float32)
          + (b1 + b2).astype(jnp.float32)[None, :])          # (B, D) f32, biases folded

    enc = encoder_output.astype(compute_dtype)
    w1t = w1.T.astype(compute_dtype)                          # (in, out) so kernel does x @ W^T
    v_row = v.reshape(1, D).astype(compute_dtype)

    # Pad S to a sublane multiple so the in-kernel reshapes don't materialize copies.
    s_pad = _round_up(S, 8)
    if s_pad != S:
        enc = jnp.pad(enc, ((0, 0), (0, s_pad - S), (0, 0)))

    # Batch tiling: ~512 rows (block_b * S) per step, packing-aligned rows, and >= 2 grid
    # steps so the DMA pipeline and v7x's second TensorCore actually engage.
    align = 16 if use_bf16 else 8
    if block_b is None:
        block_b = max(align, pl.next_power_of_2(pl.cdiv(512, s_pad)))
    block_b = _round_up(max(block_b, align), align)
    block_b = min(block_b, max(align, _round_up(pl.cdiv(B, 2), align)))
    num_blocks = max(2, pl.cdiv(B, block_b))
    Bp = num_blocks * block_b
    if Bp != B:                                               # padded rows sliced off below
        enc = jnp.pad(enc, ((0, Bp - B), (0, 0), (0, 0)))
        h2 = jnp.pad(h2, ((0, Bp - B), (0, 0)))

    kernel = functools.partial(_global_attention_kernel, s_valid=S,
                               tanh_bf16=tanh_bf16, ctx_on_mxu=ctx_on_mxu)

    grid_spec = pltpu.PrefetchScalarGridSpec(
        num_scalar_prefetch=0,
        grid=(num_blocks,),
        in_specs=[
            # Streamed per-step tiles (default double buffering). If the encoder DMA is
            # still exposed at large S*D, bump this spec to pipeline_mode=pl.Buffered(3).
            pl.BlockSpec((block_b, s_pad, D), lambda b: (b, 0, 0)),   # encoder tile
            pl.BlockSpec((block_b, D), lambda b: (b, 0)),             # hoisted W2 proj tile
            # Grid-invariant operands: constant index_map (no re-DMA) + single buffer.
            pl.BlockSpec((D, D), lambda b: (0, 0), pipeline_mode=pl.Buffered(1)),  # W1^T
            pl.BlockSpec((1, D), lambda b: (0, 0), pipeline_mode=pl.Buffered(1)),  # V row
        ],
        out_specs=[
            pl.BlockSpec((block_b, D), lambda b: (b, 0)),             # context
            pl.BlockSpec((block_b, s_pad), lambda b: (b, 0)),         # attention (lane-dense)
        ],
    )

    ctx, attn = pl.pallas_call(
        kernel,
        out_shape=(
            jax.ShapeDtypeStruct((Bp, D), jnp.float32),
            jax.ShapeDtypeStruct((Bp, s_pad), jnp.float32),
        ),
        grid_spec=grid_spec,
        compiler_params=pltpu.CompilerParams(
            dimension_semantics=("parallel",),
            vmem_limit_bytes=_vmem_limit_bytes(),
        ),
    )(enc, h2, w1t, v_row)

    return ctx[:B], attn[:B, :S, None]                        # PyTorch (B, S, 1) layout


def init_params(key, dense_dim):
    """Deterministic synthetic init in PyTorch layout: W (out, in), b (out,).
    W1, W2, V weights ~ N(0, 0.01) per the module; biases small normals."""
    k = jax.random.split(key, 6)
    D = dense_dim
    w1 = 0.01 * jax.random.normal(k[0], (D, D), jnp.float32)
    w2 = 0.01 * jax.random.normal(k[1], (D, D), jnp.float32)
    v = 0.01 * jax.random.normal(k[2], (1, D), jnp.float32)
    b1 = 0.01 * jax.random.normal(k[3], (D,), jnp.float32)
    b2 = 0.01 * jax.random.normal(k[4], (D,), jnp.float32)
    bv = 0.01 * jax.random.normal(k[5], (1,), jnp.float32)
    return (w1, b1, w2, b2, v, bv)


def reference(encoder_output, decoder_h, params):
    w1, b1, w2, b2, v, bv = params
    dec = decoder_h[:, None, :]                                       # (B, 1, D)
    t = jnp.tanh(encoder_output @ w1.T + b1 + dec @ w2.T + b2)        # (B, S, D)
    scores = t @ v.T + bv                                             # (B, S, 1)
    attn = jax.nn.softmax(scores, axis=1)
    ctx = jnp.sum(attn * encoder_output, axis=1)
    return ctx, attn


if __name__ == "__main__":
    key = jax.random.PRNGKey(0)
    k_enc, k_dec, k_par, k_enc2, k_dec2 = jax.random.split(key, 5)

    # --- Test 1: f32 path, tight tolerance ---------------------------------------
    B, S, D = 2, 8, 32
    encoder_output = jax.random.normal(k_enc, (B, S, D), jnp.float32)
    decoder_h = jax.random.normal(k_dec, (B, D), jnp.float32)
    params = init_params(k_par, D)

    ctx_ref_v, attn_ref_v = reference(encoder_output, decoder_h, params)

    ctx, attn = global_attention(encoder_output, decoder_h, params, use_bf16=False)
    jax.block_until_ready((ctx, attn))
    assert ctx.shape == (B, D) and attn.shape == (B, S, 1)
    assert jnp.allclose(ctx, ctx_ref_v, atol=1e-4, rtol=1e-4)
    assert jnp.allclose(attn, attn_ref_v, atol=1e-4, rtol=1e-4)

    # --- Test 2: default bf16 operands + bf16 tanh (v6e/v7x fast path) ------------
    ctx_bf, attn_bf = global_attention(encoder_output, decoder_h, params, use_bf16=True)
    jax.block_until_ready((ctx_bf, attn_bf))
    assert jnp.allclose(ctx_bf, ctx_ref_v, atol=3e-2, rtol=3e-2)
    assert jnp.allclose(attn_bf, attn_ref_v, atol=3e-2, rtol=3e-2)

    # --- Test 3: ragged S (sequence padding + masking) and batch padding, f32 -----
    B2, S2 = 3, 5
    enc2_in = jax.random.normal(k_enc2, (B2, S2, D), jnp.float32)
    dec2_in = jax.random.normal(k_dec2, (B2, D), jnp.float32)
    ctx2_ref, attn2_ref = reference(enc2_in, dec2_in, params)
    ctx2, attn2 = global_attention(enc2_in, dec2_in, params, use_bf16=False)
    jax.block_until_ready((ctx2, attn2))
    assert ctx2.shape == (B2, D) and attn2.shape == (B2, S2, 1)
    assert jnp.allclose(ctx2, ctx2_ref, atol=1e-4, rtol=1e-4)
    assert jnp.allclose(attn2, attn2_ref, atol=1e-4, rtol=1e-4)

    print("KERNEL_OK")
</pallas_src>

<mosaic_0001>
module attributes {stable_mosaic.version = 11 : i64} {
  func.func @_global_attention_kernel(%arg0: i32, %arg1: memref<8x8x32xf32, #tpu.memory_space<vmem>>, %arg2: memref<8x32xf32, #tpu.memory_space<vmem>>, %arg3: memref<32x32xf32, #tpu.memory_space<vmem>>, %arg4: memref<1x32xf32, #tpu.memory_space<vmem>>, %arg5: memref<8x32xf32, #tpu.memory_space<vmem>>, %arg6: memref<8x8xf32, #tpu.memory_space<vmem>>) attributes {dimension_semantics = [#tpu.dimension_semantics<parallel>], iteration_bounds = array<i64: 2>, scalar_prefetch = 0 : i64, scratch_operands = 0 : i64, tpu.core_type = #tpu.core_type<tc>, window_params = [{transform_indices = @transform_0, window_bounds = array<i64: 8, 8, 32>}, {transform_indices = @transform_1, window_bounds = array<i64: 8, 32>}, {pipeline_mode = #tpu.pipeline_mode<synchronous>, transform_indices = @transform_2, window_bounds = array<i64: 32, 32>}, {pipeline_mode = #tpu.pipeline_mode<synchronous>, transform_indices = @transform_3, window_bounds = array<i64: 1, 32>}, {transform_indices = @transform_4, window_bounds = array<i64: 8, 32>}, {transform_indices = @transform_5, window_bounds = array<i64: 8, 8>}]} {
    %c0 = arith.constant 0 : index
    %c0_0 = arith.constant 0 : index
    %c0_1 = arith.constant 0 : index
    %0 = vector.load %arg1[%c0, %c0_0, %c0_1] : memref<8x8x32xf32, #tpu.memory_space<vmem>>, vector<8x8x32xf32>
    %1 = vector.shape_cast %0 : vector<8x8x32xf32> to vector<64x32xf32>
    %c0_2 = arith.constant 0 : index
    %c0_3 = arith.constant 0 : index
    %2 = vector.load %arg3[%c0_2, %c0_3] : memref<32x32xf32, #tpu.memory_space<vmem>>, vector<32x32xf32>
    %cst = arith.constant dense<0.000000e+00> : vector<64x32xf32>
    %3 = tpu.matmul %1, %2, %cst {dimension_numbers = #tpu.dot_dimension_numbers<[1], [0], [0], [1], [0, 0, 1, 1], [], []>} : vector<64x32xf32>, vector<32x32xf32>, vector<64x32xf32> -> vector<64x32xf32>
    %4 = vector.shape_cast %3 : vector<64x32xf32> to vector<8x8x32xf32>
    %c0_4 = arith.constant 0 : index
    %c0_5 = arith.constant 0 : index
    %5 = vector.load %arg2[%c0_4, %c0_5] : memref<8x32xf32, #tpu.memory_space<vmem>>, vector<8x32xf32>
    %6 = vector.shape_cast %5 : vector<8x32xf32> to vector<8x1x32xf32>
    %7 = vector.broadcast %6 : vector<8x1x32xf32> to vector<8x8x32xf32>
    %8 = arith.addf %4, %7 : vector<8x8x32xf32>
    %9 = math.tanh %8 : vector<8x8x32xf32>
    %c0_6 = arith.constant 0 : index
    %c0_7 = arith.constant 0 : index
    %10 = vector.load %arg4[%c0_6, %c0_7] : memref<1x32xf32, #tpu.memory_space<vmem>>, vector<1x32xf32>
    %11 = vector.shape_cast %10 : vector<1x32xf32> to vector<1x1x32xf32>
    %12 = vector.broadcast %11 : vector<1x1x32xf32> to vector<8x8x32xf32>
    %13 = arith.mulf %9, %12 : vector<8x8x32xf32>
    %cst_8 = arith.constant dense<0.000000e+00> : vector<8x8xf32>
    %14 = vector.multi_reduction <add>, %13, %cst_8 [2] : vector<8x8x32xf32> to vector<8x8xf32>
    %cst_9 = arith.constant dense<0xFF800000> : vector<8xf32>
    %15 = vector.multi_reduction <maximumf>, %14, %cst_9 [1] : vector<8x8xf32> to vector<8xf32>
    %16 = vector.shape_cast %15 : vector<8xf32> to vector<8x1xf32>
    %17 = vector.broadcast %16 : vector<8x1xf32> to vector<8x8xf32>
    %18 = arith.subf %14, %17 : vector<8x8xf32>
    %19 = math.exp %18 : vector<8x8xf32>
    %cst_10 = arith.constant dense<0.000000e+00> : vector<8xf32>
    %20 = vector.multi_reduction <add>, %19, %cst_10 [1] : vector<8x8xf32> to vector<8xf32>
    %21 = vector.shape_cast %20 : vector<8xf32> to vector<8x1xf32>
    %22 = tpu.reciprocal %21 : vector<8x1xf32> -> vector<8x1xf32>
    %23 = vector.broadcast %22 : vector<8x1xf32> to vector<8x8xf32>
    %24 = arith.mulf %19, %23 : vector<8x8xf32>
    %c0_11 = arith.constant 0 : index
    %c0_12 = arith.constant 0 : index
    %25 = vector.load %arg6[%c0_11, %c0_12] : memref<8x8xf32, #tpu.memory_space<vmem>>, vector<8x8xf32>
    tpu.vector_store %arg6[%c0_11, %c0_12], %24 {strides = array<i32>} : memref<8x8xf32, #tpu.memory_space<vmem>>, vector<8x8xf32>,
    %26 = vector.shape_cast %24 : vector<8x8xf32> to vector<8x1x8xf32>
    "tpu.trace_start"() <{level = 10 : i32, message = "bqs,bsd->bqd"}> : () -> ()
    %cst_13 = arith.constant dense<0.000000e+00> : vector<8x1x32xf32>
    %27 = tpu.matmul %26, %0, %cst_13 {dimension_numbers = #tpu.dot_dimension_numbers<[2], [1], [1], [2], [0, 0, 0, 1, 1, 2], [0], [0]>} : vector<8x1x8xf32>, vector<8x8x32xf32>, vector<8x1x32xf32> -> vector<8x1x32xf32>
    "tpu.trace_stop"() : () -> ()
    %28 = vector.shape_cast %27 : vector<8x1x32xf32> to vector<8x32xf32>
    %c0_14 = arith.constant 0 : index
    %c0_15 = arith.constant 0 : index
    %29 = vector.load %arg5[%c0_14, %c0_15] : memref<8x32xf32, #tpu.memory_space<vmem>>, vector<8x32xf32>
    tpu.vector_store %arg5[%c0_14, %c0_15], %28 {strides = array<i32>} : memref<8x32xf32, #tpu.memory_space<vmem>>, vector<8x32xf32>,
    return
  }
  func.func @transform_0(%arg0: i32) -> (i32, i32, i32) {
    %c0_i32 = arith.constant 0 : i32
    %c0_i32_0 = arith.constant 0 : i32
    %c0_i32_1 = arith.constant 0 : i32
    return %arg0, %c0_i32, %c0_i32_0 : i32, i32, i32
  }
  func.func @transform_1(%arg0: i32) -> (i32, i32) {
    %c0_i32 = arith.constant 0 : i32
    %c0_i32_0 = arith.constant 0 : i32
    return %arg0, %c0_i32 : i32, i32
  }
  func.func @transform_2(%arg0: i32) -> (i32, i32) {
    %c0_i32 = arith.constant 0 : i32
    %c0_i32_0 = arith.constant 0 : i32
    %c0_i32_1 = arith.constant 0 : i32
    return %c0_i32, %c0_i32_0 : i32, i32
  }
  func.func @transform_3(%arg0: i32) -> (i32, i32) {
    %c0_i32 = arith.constant 0 : i32
    %c0_i32_0 = arith.constant 0 : i32
    %c0_i32_1 = arith.constant 0 : i32
    return %c0_i32, %c0_i32_0 : i32, i32
  }
  func.func @transform_4(%arg0: i32) -> (i32, i32) {
    %c0_i32 = arith.constant 0 : i32
    %c0_i32_0 = arith.constant 0 : i32
    return %arg0, %c0_i32 : i32, i32
  }
  func.func @transform_5(%arg0: i32) -> (i32, i32) {
    %c0_i32 = arith.constant 0 : i32
    %c0_i32_0 = arith.constant 0 : i32
    return %arg0, %c0_i32 : i32, i32
  }
}

</mosaic_0001>

<bundles_post_ra>
// kernel: tpu_custom_call.1
= control target key start
LH: loop header
LB: loop body
LE: loop exit
PB: predicated region body
PF: predicated region fallthrough
CT: control target
= control target key end

     0   :  { %s2567_s0 = inlined_call_operand.hbm [shape: f32[16,8,32], index: 0, kind: input, shape index: {}]   ;;  %s2568_s1 = inlined_call_operand.hbm [shape: f32[16,32], index: 1, kind: input, shape index: {}]   ;;  %s2569_s2 = inlined_call_operand.hbm [shape: f32[32,32], index: 2, kind: input, shape index: {}]   ;;  %s2570_s3 = inlined_call_operand.vmem [shape: f32[1,32], index: 3, kind: input, shape index: {}]   ;;  %s2571_s4 = inlined_call_operand.hbm [shape: f32[16,32], index: 4, kind: output, shape index: {0}]   ;;  %s2572_s5 = inlined_call_operand.vmem [shape: f32[16,8], index: 5, kind: output, shape index: {1}]  }
   0x1   :  { %2577 = sst [smem:[#allocation14_spill]] %s2567_s0 }
   0x2   :  { %2578 = sst [smem:[#allocation15_spill]] %s2569_s2 }
   0x3   :  { %11 = vsyncpa [#allocation3], 0 }
   0x4   :  { %13 = vsyncpa [#allocation3 + $0x1], 0 }
   0x5   :  { %14 = vsyncpa [#allocation6], 0 }
   0x6   :  { %16 = vsyncpa [#allocation6 + $0x1], 0 }
   0x7   :  { %17 = vsyncpa [#allocation4], 0 }
   0x8   :  { %19 = vsyncpa [#allocation4 + $0x1], 0  ;;  %s2107_s18 = smov 0   ;;  %s2109_s19 = smov 0  }
   0x9   :  { %s2111_s20 = smov 0   ;;  %s2113_s21 = smov 0  }
   0xa LB: > { %s2128_s22 = sadd.s32 4294967295, %s2065_s21   ;;  %s1665_s23 = sadd.s32 4294967294, %s2065_s21   ;;  %s2065_s21 = sphi %s2113_s21, %s2601_s21   ;;  %s2061_s20 = sphi %s2111_s20, %s2600_s20   ;;  %s2057_s19 = sphi %s2109_s19, %s2599_s19   ;;  %s2053_s18 = sphi %s2107_s18, %s2598_s18  }
   0xb   : > { %p45_p0 = scmp.ne.s32.totalorder %s2057_s19, %s2053_s18  ;;  %p2573_p1 = scmp.eq.s32.totalorder %s2128_s22, 0 }
   0xc   : > { %p143_p3 = scmp.eq.s32.totalorder %s1665_s23, 1  ;;  %p1666_p5 = scmp.ge.s32.totalorder %s2065_s21, 1 }
   0xd   : > { %p2137_p4 = por %p2573_p1, %p45_p0  ;;  %p176_p7 = scmp.lt.s32.totalorder %s2065_s21, 3 }
   0xe   : > { %p2142_p6 = por %p143_p3, %p45_p0  ;;  %s2067_s27 = smov [#allocation7]  }
   0xf   : > { %s2579_s24 = scalar_select %p2137_p4, 1, 0 }
  0x10   : > { %s2580_s25 = scalar_select %p2142_p6, 1, 0 }
  0x11   : > { %p2147_p8 = pnand %p1666_p5, %p176_p7  ;;  %s188_s28 = sshll.u32 %s2067_s27, 4  ;;  %s2151_s28 = int_to_ptr.vmem [resolvable:$true] %s188_s28 }
  0x12   : > { %s2163_s30 = sadd.s32 1, %s2065_s21   ;;  %s32_s6 = sadd.s32 1, %s2061_s20 }
  0x13   : > { %s2581_s26 = scalar_select %p2147_p8, 1, 0 }
  0x14   : > { %p1808_p9 = pneg %p2147_p8  ;;  %s29_s7 = ssub.s32 %s2065_s21, %s2163_s30 }
  0x15   : > { %s2583_s2 = sld [smem:[#allocation15_spill]] }
  0x16   : > { %p2158_p11 = pnand %p1808_p9, %p2573_p1 }
  0x18   : > { %p1905_p13 = pneg %p2158_p11 }
  0x1b   : > { %s1903_s10 = scalar_lea.hbm %s2583_s2, 512 }
  0x1c   : > { %p1904_p12 = scmp.ne.s32.totalorder %s2583_s2, %s1903_s10  ;;  %p1910_p5 = scmp.lt.u32.totalorder %s1903_s10, %s2583_s2 }
  0x1e   : > { %p1906_p0 = pnand %p1905_p13, %p1904_p12 }
  0x20   : > { %p1907_p3 = pneg %p1906_p0 }
  0x22   : > { %p1912_p7 = pnand %p1910_p5, %p1907_p3 }
  0x24   : > { %1915 = shalt.err (!%p1912_p7)
}
  0x25   : > { %s1916_s15 = scalar_lea.vmem %s2151_s28, 512  ;;  %p1924_p2 = scmp.lt.s32.totalorder %s2151_s28, %s2151_s28 }
  0x26   : > { %p1917_p9 = scmp.ne.s32.totalorder %s2151_s28, %s1916_s15  ;;  %p1925_p6 = scmp.lt.s32.totalorder %s1916_s15, %s1916_s15 }
  0x28   : > { %p1919_p10 = pnand %p1917_p9, %p1905_p13  ;;  %p1926_p4 = por %p1925_p6, %p1924_p2 }
  0x2a   : > { %p1920_p1 = pneg %p1919_p10 }
  0x2c   : > { %p1927_p8 = pnand %p1926_p4, %p1920_p1 }
  0x2e   : > { %1930 = shalt.err (!%p1927_p8)
}
  0x2f   : > { %s2068_s16 = smov 128   ;;  %s2069_s17 = smov 8  }
  0x30   : > { %1811 = dma.hbm_to_vmem [thread:$0]  (!%p2158_p11), %s2583_s2, 512, %s2151_s28, [#allocation6], %s2068_s16, %s2068_s16, %s2069_s17  }
  0x31   : > { %p30_p1 = scmp.eq.s32.totalorder %s29_s7, 0  ;;  %p39_p2 = scmp.ne.s32.totalorder %s2061_s20, %s2057_s19 }
  0x32   : > { %p40_p4 = scmp.eq.s32.totalorder %s2065_s21, 0  ;;  %p1824_p6 = scmp.lt.s32.totalorder %s2065_s21, 2 }
  0x33   : > { %s2197_s8 = scalar_select %p30_p1, %s2061_s20, %s32_s6  }
  0x34   : > { %p41_p8 = por %p40_p4, %p39_p2  ;;  %p2585_p10 = scmp.eq.s32.totalorder %s2128_s22, 1 }
  0x35   : > { %2584 = sst [smem:[#allocation13_spill]] %s2197_s8  ;;  %s2206_s29 = sand.u32 1, %s2061_s20  }
  0x36   : > { %p2201_p12 = por %p2585_p10, %p39_p2  ;;  %s1701_s10 = sshll.u32 %s2065_s21, 10 }
  0x37   : > { %s1669_s11 = sshll.u32 %s2206_s29, 6  ;;  %s2587_s0 = sld [smem:[#allocation14_spill]] }
  0x38   : > { %s2586_s9 = scalar_select %p2201_p12, 1, 0 }
  0x39   : > { %s209_s6 = scalar_lea.vmem [#allocation2], %s1669_s11  ;;  %p2215_p11 = pnand %p1824_p6, %p41_p8 }
  0x3a   : > { %s216_s13 = sshll.u32 %s209_s6, 4  ;;  %s206_s23 = scalar_lea.sflag [#allocation3], %s2206_s29  ;;  %s2219_s13 = int_to_ptr.vmem [resolvable:$true] %s216_s13 }
  0x3b   : > { %p1933_p0 = pneg %p2215_p11 }
  0x3d   : > { %s2213_s7 = scalar_lea.hbm %s2587_s0, %s1701_s10  ;;  %s1936_s28 = scalar_lea.hbm %s2587_s0, 2048 }
  0x3e   : > { %s1931_s27 = scalar_lea.hbm %s2213_s7, 1024  ;;  %p1937_p7 = scmp.lt.u32.totalorder %s2213_s7, %s2587_s0 }
  0x3f   : > { %p1932_p13 = scmp.ne.s32.totalorder %s2213_s7, %s1931_s27  ;;  %p1938_p9 = scmp.lt.u32.totalorder %s1936_s28, %s1931_s27 }
  0x40   : > { %p1940_p2 = scmp.lt.u32.totalorder %s1931_s27, %s2213_s7 }
  0x41   : > { %p1934_p3 = pnand %p1933_p0, %p1932_p13  ;;  %p1939_p1 = por %p1938_p9, %p1937_p7 }
  0x43   : > { %p1935_p5 = pneg %p1934_p3  ;;  %p1941_p4 = por %p1940_p2, %p1939_p1 }
  0x45   : > { %p1942_p6 = pnand %p1941_p4, %p1935_p5 }
  0x47   : > { %1945 = shalt.err (!%p1942_p6)
}
  0x48   : > { %s1946_s15 = scalar_lea.vmem %s2219_s13, 1024  ;;  %s2070_s10 = smov [#allocation2]  }
  0x49   : > { %p1947_p8 = scmp.ne.s32.totalorder %s2219_s13, %s1946_s15  ;;  %s1951_s11 = sshll.u32 %s2070_s10, 4  ;;  %s1952_s11 = int_to_ptr.vmem [resolvable:$false] %s1951_s11 }
  0x4a   : > { %s1953_s12 = scalar_lea.vmem %s1952_s11, 2048  ;;  %p1954_p3 = scmp.lt.s32.totalorder %s2219_s13, %s1952_s11 }
  0x4b   : > { %p1949_p10 = pnand %p1947_p8, %p1933_p0  ;;  %p1955_p7 = scmp.lt.s32.totalorder %s1953_s12, %s1946_s15 }
  0x4d   : > { %p1950_p13 = pneg %p1949_p10  ;;  %p1956_p9 = por %p1955_p7, %p1954_p3 }
  0x4f   : > { %p1957_p1 = pnand %p1956_p9, %p1950_p13 }
  0x51   : > { %1960 = shalt.err (!%p1957_p1)
}
  0x52   : > { %1815 = dma.hbm_to_vmem [thread:$0]  (!%p2215_p11), %s2213_s7, 1024, %s2219_s13, %s206_s23, %s2068_s16, %s2068_s16, %s2069_s17  }
  0x53   : > { %s1672_s27 = sshll.u32 %s2206_s29, 3  ;;  %s1673_s28 = sshll.u32 %s2065_s21, 7 }
  0x54   : > { %s2258_s10 = scalar_lea.hbm %s2568_s1, %s1673_s28  ;;  %s230_s11 = scalar_lea.vmem [#allocation5], %s1672_s27 }
  0x55   : > { %s237_s12 = sshll.u32 %s230_s11, 4  ;;  %s2589_s0 = sand.u32 1, %s2065_s21   ;;  %s238_s12 = int_to_ptr.vmem [resolvable:$true] %s237_s12 }
  0x56   : > { %s227_s2 = scalar_lea.sflag [#allocation6], %s2589_s0  ;;  %s1961_s8 = scalar_lea.hbm %s2258_s10, 128 }
  0x57   : > { %p1962_p5 = scmp.ne.s32.totalorder %s2258_s10, %s1961_s8  ;;  %s1966_s29 = scalar_lea.hbm %s2568_s1, 256 }
  0x58   : > { %p1967_p6 = scmp.lt.u32.totalorder %s2258_s10, %s2568_s1  ;;  %p1968_p8 = scmp.lt.u32.totalorder %s1966_s29, %s1961_s8 }
  0x59   : > { %p1964_p2 = pnand %p1962_p5, %p1933_p0  ;;  %p1970_p13 = scmp.lt.u32.totalorder %s1961_s8, %s2258_s10 }
  0x5a   : > { %p1969_p10 = por %p1968_p8, %p1967_p6 }
  0x5b   : > { %p1965_p4 = pneg %p1964_p2 }
  0x5c   : > { %p1971_p3 = por %p1970_p13, %p1969_p10 }
  0x5e   : > { %p1972_p7 = pnand %p1971_p3, %p1965_p4 }
  0x60   : > { %1975 = shalt.err (!%p1972_p7)
}
  0x61   : > { %s1976_s0 = scalar_lea.vmem %s238_s12, 128  ;;  %s2071_s23 = smov [#allocation5]  }
  0x62   : > { %p1977_p9 = scmp.ne.s32.totalorder %s238_s12, %s1976_s0  ;;  %s1981_s27 = sshll.u32 %s2071_s23, 4  ;;  %s1982_s27 = int_to_ptr.vmem [resolvable:$false] %s1981_s27 }
  0x63   : > { %s1983_s28 = scalar_lea.vmem %s1982_s27, 256  ;;  %p1984_p2 = scmp.lt.s32.totalorder %s238_s12, %s1982_s27 }
  0x64   : > { %p1979_p1 = pnand %p1977_p9, %p1933_p0  ;;  %p1985_p12 = scmp.lt.s32.totalorder %s1983_s28, %s1976_s0 }
  0x66   : > { %p1980_p5 = pneg %p1979_p1  ;;  %p1986_p6 = por %p1985_p12, %p1984_p2 }
  0x68   : > { %p1987_p8 = pnand %p1986_p6, %p1980_p5 }
  0x6a   : > { %1990 = shalt.err (!%p1987_p8)
}
  0x6b   : > { %1818 = dma.hbm_to_vmem [thread:$0]  (!%p2215_p11), %s2258_s10, 128, %s238_s12, %s227_s2  }
  0x6c   : > { %p2590_p4 = scmp.ne.s32.totalorder %s2581_s26, 0 }
  0x6d   : > { %s2284_s8 = sand.u32 (!%p2590_p4), 1, %s2057_s19   ;;  %p2591_p12 = scmp.ne.s32.totalorder (!%p2590_p4), %s2579_s24, 0 }
  0x6e   : > { %246 = sbr.rel (%p2590_p4) target bundleno = 1384 (0x568), region = 36  ;;  %s1675_s15 = sshll.u32 (!%p2590_p4), %s2284_s8, 6 }
  0x6f   : > { %s249_s6 = scalar_lea.sflag (!%p2590_p4), [#allocation3], %s2284_s8  ;;  %s2288_s11 = scalar_lea.vmem (!%p2590_p4), [#allocation2], %s1675_s15 }
  0x75   : > { %2036 = dma.done.wait (%p2591_p12), %s249_s6, 1024  }
  0x76   : > { %2038 = vsyncadd (%p2591_p12), %s249_s6, 4294966272  ;;  %s257_s2 = sand.u32 1, %s2128_s22   ;;  %s1676_s26 = sshll.u32 %s2284_s8, 3 }
  0x77   : > { %s258_s14 = scalar_lea.sflag [#allocation6], %s257_s2  ;;  %s2298_s10 = scalar_lea.vmem [#allocation5], %s1676_s26 }
  0x78   : > { %2040 = dma.done.wait (%p2591_p12), %s258_s14, 128  }
  0x79   : > { %2042 = vsyncadd (%p2591_p12), %s258_s14, 4294967168  ;;  %p2592_p11 = scmp.eq.s32.totalorder %s2128_s22, 0 }
  0x7b   : > { %2044 = dma.done.wait (%p2592_p11), [#allocation6], 512   ;;  %p2593_p0 = pmov %p2592_p11 }
  0x7c   : > { %vm318_vm0 = vcmask 261120   ;;  %v314_v0 = vld [vmem:[#allocation7] sm:$0xff]  ;;  %v315_v1 = vld [vmem:[#allocation7 + $0x8] sm:$0xff]  ;;  %v316_v2 = vld [vmem:[#allocation7 + $0x10] sm:$0xff]  ;;  %v2072_v14 = vmov 1966171168   ;;  %v454_v16 = vlaneseq }
  0x7d   : > { %2046 = vsyncadd (%p2593_p0), [#allocation6], 4294966784  ;;  %v1790_v3 = vpack.c.bf16 %v315_v1, %v314_v0  ;;  %v317_v4 = vld [vmem:[#allocation7 + $0x18] sm:$0xff]  ;;  %v2309_v5 = vld [vmem:[%s2288_s11] sm:$0xff]  ;;  %v452_v15 = vunpack.c.l.s4 %v2072_v14  ;;  %vm636_vm1 = vcmask 1041409   ;;  %vm638_vm2 = vcmask 1042434  }
  0x7e   : > { %v1794_v6 = vpack.c.bf16 %v317_v4, %v316_v2  ;;  %1738 = vmatprep.mubr.msk.f32.mxu0 %vm318_vm0, %v2309_v5  ;;  %v2314_v7 = vld [vmem:[%s2288_s11 + $0x8] sm:$0xff]  ;;  %v2317_v8 = vld [vmem:[%s2288_s11 + $0x10] sm:$0xff]  ;;  %v2324_v9 = vld [vmem:[%s2288_s11 + $0x18] sm:$0xff]  ;;  %v2349_v18 = vshrl.u32 %v454_v16, 7  ;;  %vm640_vm3 = vcmask 1043459   ;;  %vm642_vm4 = vcmask 1044484  }
  0x7f   : > { %1791 = vmatprep.subr.bf16.mxu0 %v1790_v3  ;;  %v2327_v10 = vld [vmem:[%s2288_s11 + $0x20] sm:$0xff]  ;;  %v2334_v11 = vld [vmem:[%s2288_s11 + $0x28] sm:$0xff]  ;;  %v2337_v12 = vld [vmem:[%s2288_s11 + $0x30] sm:$0xff]  ;;  %v453_v17 = vunpack.c.0.s8 %v452_v15  ;;  %vm644_vm5 = vcmask 1045509   ;;  %vm646_vm6 = vcmask 1046534   ;;  %vm648_vm7 = vcmask 1047559  }
  0x80   : > { %1793 = vmatpush3.bf16.msra.mxu0 %v1790_v3  ;;  %v2344_v13 = vld [vmem:[%s2288_s11 + $0x38] sm:$0xff]  ;;  %v448_v20 = vld [vmem:[%s2298_s10] sm:$0xff]  ;;  %v2354_v25 = vsub.s32 0, %v2349_v18  ;;  %vm651_vm8 = vcmask 64512   ;;  %vm2075_vm9 = vmmov 0   ;;  %p302_p10 = scmp.lt.s32.totalorder %s2128_s22, 1 }
  0x81   : > { %1795 = vmatprep.subr.bf16.mxu0 %v1794_v6  ;;  %v456_v19 = vsub.s32 %v453_v17, %v2349_v18  ;;  %v450_v23 = vcombine.high %v448_v20, %v448_v20  ;;  %v1688_v55 = vld [vmem:[%s2570_s3] ss:$0 sm:$0xff]  ;;  %s1698_s0 = sshll.u32 %s2128_s22, 7  ;;  %s294_s23 = scalar_lea.vmem [#allocation8], %s1676_s26 }
  0x82   : > { %s303_s16 = scalar_select %p302_p10, %s2128_s22, 1 }
  0x83   : > { %v457_v21 = vrot.slane %v448_v20, %v456_v19  ;;  %v464_v26 = vrot.slane %v450_v23, %v456_v19  ;;  %s1536_s27 = sshll.u32 %s294_s23, 4  ;;  %s2521_s6 = scalar_lea.hbm %s2571_s4, %s1698_s0  ;;  %s2523_s27 = int_to_ptr.vmem [resolvable:$true] %s1536_s27 }
  0x84   : > { %1797 = vmatpush3.bf16.msra.mxu0 %v1794_v6  ;;  %s1679_s17 = sshll.u32 %s303_s16, 3  ;;  %s1519_s22 = scalar_lea.sflag [#allocation4], %s2284_s8 }
  0x85   : > { %v465_v22 = vcombine.high %v457_v21, %v457_v21  ;;  %v473_v27 = vrot.slane %v457_v21, %v456_v19  ;;  %v466_v30 = vcombine.high %v464_v26, %v464_v26  ;;  %v480_v40 = vrot.slane %v464_v26, %v456_v19  ;;  %s305_s13 = scalar_lea.vmem %s2572_s5, %s1679_s17  ;;  %s1991_s11 = scalar_lea.vmem %s2523_s27, 128 }
  0x86   : > { %p1992_p13 = scmp.ne.s32.totalorder %s2523_s27, %s1991_s11  ;;  %p2594_p3 = scmp.ne.s32.totalorder %s2586_s9, 0 }
  0x87   : > { %1739 = vmatmul.mubr.msk.f32.vlgmr.msra.gmra.mrb[0].mxu0 %vm318_vm0, %v2314_v7  ;;  %v487_v24 = vrot.slane %v465_v22, %v456_v19  ;;  %v502_v31 = vrot.slane %v473_v27, %v2354_v25  ;;  %v495_v32 = vcombine.high %v473_v27, %v473_v27  ;;  %v494_v37 = vrot.slane %v466_v30, %v456_v19  ;;  %s2076_s2 = smov [#allocation8]  }
  0x88   : > { %1741 = vmatprep.mubr.msk.f32.mxu0 %vm318_vm0, %v2317_v8  ;;  %v518_v47 = vrot.slane %v480_v40, %v2354_v25  ;;  %v496_v48 = vcombine.high %v480_v40, %v480_v40  ;;  %p1993_p7 = pnand %p1992_p13, %p2594_p3  ;;  %s1995_s26 = sshll.u32 %s2076_s2, 4  ;;  %s1996_s26 = int_to_ptr.vmem [resolvable:$false] %s1995_s26 }
  0x89   : > { %v506_v28 = vrot.slane %v487_v24, %v2354_v25  ;;  %v497_v29 = vcombine.high %v487_v24, %v487_v24  ;;  %v510_v39 = vrot.slane %v495_v32, %v2354_v25  ;;  %v522_v44 = vrot.slane %v494_v37, %v2354_v25  ;;  %s1997_s14 = scalar_lea.vmem %s1996_s26, 256  ;;  %p1998_p1 = scmp.lt.s32.totalorder %s2523_s27, %s1996_s26 }
  0x8a   : > { %v498_v45 = vcombine.high %v494_v37, %v494_v37  ;;  %v526_v54 = vrot.slane %v496_v48, %v2354_v25  ;;  %p1994_p9 = pneg %p1993_p7  ;;  %p1999_p5 = scmp.lt.s32.totalorder %s1997_s14, %s1991_s11 }
  0x8b   : > { %1742 = vmatmul.mubr.msk.f32.gmra.mrb[2].mxu0 %vm318_vm0, %v2324_v9  ;;  %v514_v36 = vrot.slane %v497_v29, %v2354_v25 }
  0x8c   : > { %1744 = vmatprep.mubr.msk.f32.mxu0 %vm318_vm0, %v2327_v10  ;;  %v530_v52 = vrot.slane %v498_v45, %v2354_v25  ;;  %p2000_p2 = por %p1999_p5, %p1998_p1 }
  0x8e   : > { %p2001_p6 = pnand %p2000_p2, %p1994_p9 }
  0x8f   : > { %1745 = vmatmul.mubr.msk.f32.gmra.mrb[4].mxu0 %vm318_vm0, %v2334_v11 }
  0x90   : > { %1747 = vmatprep.mubr.msk.f32.mxu0 %vm318_vm0, %v2337_v12 }
  0x93   : > { %1748 = vmatmul.mubr.msk.f32.gmra.mrb[6].mxu0 %vm318_vm0, %v2344_v13 }
 0x15a   : > { %v1740_v33 = vpop.f32.mrb[0].mxu0 }
 0x15b   : > { %v540_v34 = vadd.f32 %v1740_v33, %v506_v28  ;;  %v409_v35 = vpop.f32.mrb[1].mxu0 }
 0x15c   : > { %v539_v38 = vadd.f32 %v502_v31, %v409_v35  ;;  %v603_v31 = vand.u32 127, %v454_v16 }
 0x15d   : > { %1869 = vtanh.f32 %v540_v34 }
 0x15e   : > { %1871 = vtanh.f32 %v539_v38  ;;  %v1743_v41 = vpop.f32.mrb[2].mxu0  ;;  %v2377_v33 = vsub.s32 %v603_v31, %v2349_v18 }
 0x15f   : > { %v542_v42 = vadd.f32 %v1743_v41, %v514_v36  ;;  %v419_v43 = vpop.f32.mrb[3].mxu0 }
 0x160   : > { %v541_v46 = vadd.f32 %v510_v39, %v419_v43 }
 0x161   : > { %1873 = vtanh.f32 %v542_v42 }
 0x162   : > { %1875 = vtanh.f32 %v541_v46  ;;  %v1746_v49 = vpop.f32.mrb[4].mxu0 }
 0x163   : > { %v544_v50 = vadd.f32 %v1746_v49, %v522_v44  ;;  %v429_v51 = vpop.f32.mrb[5].mxu0 }
 0x164   : > { %v543_v53 = vadd.f32 %v518_v47, %v429_v51 }
 0x165   : > { %1877 = vtanh.f32 %v544_v50 }
 0x166   : > { %1879 = vtanh.f32 %v543_v53  ;;  %v1749_v56 = vpop.f32.mrb[6].mxu0 }
 0x167   : > { %v1870_v57 = vpop.eup %1869  ;;  %v546_v58 = vadd.f32 %v1749_v56, %v530_v52  ;;  %v439_v59 = vpop.f32.mrb[7].mxu0  ;;  %v2073_v56 = vmov 0  }
 0x168   : > { %v1872_v60 = vpop.eup %1871  ;;  %v545_v61 = vadd.f32 %v526_v54, %v439_v59  ;;  %v563_v62 = vmul.f32 %v1870_v57, %v1688_v55  ;;  %1867 = vset.pattern.permute.xlu0 %v2073_v56  ;;  %1866 = vset.pattern.permute.xlu1 %v2073_v56  ;;  %v662_v57 = vsub.s32 1, %v2349_v18  ;;  %v670_v59 = vsub.s32 3, %v2349_v18 }
 0x169   : > { %1881 = vtanh.f32 %v546_v58  ;;  %v562_v0 = vmul.f32 %v1872_v60, %v1688_v55  ;;  %v666_v58 = vsub.s32 2, %v2349_v18 }
 0x16a   : > { %1883 = vtanh.f32 %v545_v61  ;;  %v573_v63 = vsel %vm318_vm0, %v563_v62, 0.0 }
 0x16b   : > { %v1874_v1 = vpop.eup %1873  ;;  %574 = vadd.xlane.f32.xlu0 %v573_v63  ;;  %v570_v4 = vsel %vm318_vm0, %v562_v0, 0.0  ;;  %v674_v0 = vsub.s32 4, %v2349_v18 }
 0x16c   : > { %v1876_v2 = vpop.eup %1875  ;;  %v565_v3 = vmul.f32 %v1874_v1, %v1688_v55 }
 0x16d   : > { %v564_v14 = vmul.f32 %v1876_v2, %v1688_v55 }
 0x16e   : > { %v579_v6 = vsel %vm318_vm0, %v565_v3, 0.0 }
 0x16f   : > { %v1878_v15 = vpop.eup %1877  ;;  %571 = vadd.xlane.f32.xlu0 %v570_v4  ;;  %580 = vadd.xlane.f32.xlu1 %v579_v6  ;;  %v576_v20 = vsel %vm318_vm0, %v564_v14, 0.0 }
 0x170   : > { %v1880_v17 = vpop.eup %1879  ;;  %v567_v21 = vmul.f32 %v1878_v15, %v1688_v55  ;;  %v678_v15 = vsub.s32 5, %v2349_v18 }
 0x171   : > { %v566_v19 = vmul.f32 %v1880_v17, %v1688_v55 }
 0x172   : > { %v585_v27 = vsel %vm318_vm0, %v567_v21, 0.0  ;;  %v682_v21 = vsub.s32 6, %v2349_v18 }
 0x173   : > { %v1882_v22 = vpop.eup %1881  ;;  %577 = vadd.xlane.f32.xlu1 %v576_v20  ;;  %v582_v23 = vsel %vm318_vm0, %v566_v19, 0.0 }
 0x174   : > { %v1884_v24 = vpop.eup %1883  ;;  %583 = vadd.xlane.f32.xlu0 %v582_v23  ;;  %v569_v28 = vmul.f32 %v1882_v22, %v1688_v55 }
 0x175   : > { %v568_v26 = vmul.f32 %v1884_v24, %v1688_v55 }
 0x176   : > { %v591_v30 = vsel %vm318_vm0, %v569_v28, 0.0 }
 0x177   : > { %586 = vadd.xlane.f32.xlu1 %v585_v27  ;;  %v588_v29 = vsel %vm318_vm0, %v568_v26, 0.0  ;;  %v686_v26 = vsub.s32 7, %v2349_v18 }
 0x178   : > { %589 = vadd.xlane.f32.xlu0 %v588_v29 }
 0x17b   : > { %592 = vadd.xlane.f32.xlu1 %v591_v30 }
 0x1f8   : > { %v575_v32 = vpop.xlane.xlu0 %574 }
 0x1f9   : > { %v611_v37 = vrot.slane %v575_v32, %v2377_v33 }
 0x1fc   : > { %v572_v34 = vpop.xlane.xlu0 %571  ;;  %v581_v35 = vpop.xlane.xlu1 %580 }
 0x1fd   : > { %v607_v36 = vrot.slane %v572_v34, %v2377_v33  ;;  %v619_v16 = vrot.slane %v581_v35, %v2377_v33 }
 0x1ff   : > { %v637_v41 = vsel %vm636_vm1, %v611_v37, %v607_v36 }
 0x200   : > { %v578_v38 = vpop.xlane.xlu1 %577 }
 0x201   : > { %v615_v39 = vrot.slane %v578_v38, %v2377_v33  ;;  %v584_v40 = vpop.xlane.xlu0 %583 }
 0x202   : > { %v623_v42 = vrot.slane %v584_v40, %v2377_v33 }
 0x203   : > { %v639_v43 = vsel %vm638_vm2, %v615_v39, %v637_v41 }
 0x204   : > { %v641_v44 = vsel %vm640_vm3, %v619_v16, %v639_v43  ;;  %v587_v45 = vpop.xlane.xlu1 %586 }
 0x205   : > { %v643_v46 = vsel %vm642_vm4, %v623_v42, %v641_v44  ;;  %v627_v47 = vrot.slane %v587_v45, %v2377_v33  ;;  %v590_v48 = vpop.xlane.xlu0 %589 }
 0x206   : > { %v631_v49 = vrot.slane %v590_v48, %v2377_v33 }
 0x207   : > { %v645_v50 = vsel %vm644_vm5, %v627_v47, %v643_v46 }
 0x208   : > { %v593_v51 = vpop.xlane.xlu1 %592  ;;  %v647_v53 = vsel %vm646_vm6, %v631_v49, %v645_v50 }
 0x209   : > { %v635_v52 = vrot.slane %v593_v51, %v2377_v33 }
 0x20b   : > { %v649_v54 = vsel %vm648_vm7, %v635_v52, %v647_v53 }
 0x20c   : > { %v652_v55 = vsel %vm651_vm8, %v649_v54, -inf }
 0x20d   : > { %653 = vmax.xlane.f32.xlu0 %v652_v55 }
 0x29a   : > { %v654_v60 = vpop.xlane.xlu0 %653 }
 0x29b   : > { %v659_v61 = vrot.slane %v654_v60, %v2354_v25  ;;  %v663_v62 = vrot.slane %v654_v60, %v662_v57  ;;  %v667_v63 = vrot.slane %v654_v60, %v666_v58  ;;  %v671_v1 = vrot.slane %v654_v60, %v670_v59 }
 0x29c   : > { %v675_v17 = vrot.slane %v654_v60, %v674_v0  ;;  %v679_v22 = vrot.slane %v654_v60, %v678_v15  ;;  %v683_v27 = vrot.slane %v654_v60, %v682_v21 }
 0x29d   : > { %v696_v2 = vsub.f32 %v572_v34, %v659_v61  ;;  %v697_v3 = vsub.f32 %v575_v32, %v663_v62  ;;  %v698_v4 = vsub.f32 %v578_v38, %v667_v63  ;;  %v699_v19 = vsub.f32 %v581_v35, %v671_v1 }
 0x29e   : > { %v700_v23 = vsub.f32 %v584_v40, %v675_v17  ;;  %v701_v28 = vsub.f32 %v587_v45, %v679_v22  ;;  %v687_v32 = vrot.slane %v654_v60, %v686_v26  ;;  %v702_v34 = vsub.f32 %v590_v48, %v683_v27 }
 0x29f   : > { %v704_v6 = vmul.f32 1.442695, %v696_v2  ;;  %v706_v14 = vmul.f32 1.442695, %v697_v3  ;;  %v708_v20 = vmul.f32 1.442695, %v698_v4 }
 0x2a0   : > { %v710_v24 = vmul.f32 1.442695, %v699_v19  ;;  %v712_v29 = vmul.f32 1.442695, %v700_v23  ;;  %v714_v35 = vmul.f32 1.442695, %v701_v28  ;;  %v703_v37 = vsub.f32 %v593_v51, %v687_v32 }
 0x2a1   : > { %1885 = vpow2.f32 %v704_v6  ;;  %v716_v38 = vmul.f32 1.442695, %v702_v34  ;;  %v2074_v27 = vmov 0.0  }
 0x2a2   : > { %1887 = vpow2.f32 %v706_v14  ;;  %v718_v40 = vmul.f32 1.442695, %v703_v37  ;;  %1750 = vmatprep.subr.mxu1 %v2074_v27  ;;  %1752 = vmatprep.mubr.msk.f32.mxu1 %vm2075_vm9, %v2074_v27 }
 0x2a3   : > { %1889 = vpow2.f32 %v708_v20  ;;  %1751 = vmatpush3.msra.mxu1 %v2309_v5  ;;  %1780 = vmatprep.subr.mxu0 %v2074_v27 }
 0x2a4   : > { %1891 = vpow2.f32 %v710_v24  ;;  %1755 = vmatprep.subr.mxu1 %v2074_v27  ;;  %1781 = vmatpush3.msra.mxu0 %v2337_v12 }
 0x2a5   : > { %1893 = vpow2.f32 %v712_v29  ;;  %1782 = vmatprep.mubr.msk.f32.mxu0 %vm2075_vm9, %v2074_v27 }
 0x2a6   : > { %1895 = vpow2.f32 %v714_v35 }
 0x2a7   : > { %1897 = vpow2.f32 %v716_v38 }
 0x2a8   : > { %1899 = vpow2.f32 %v718_v40 }
 0x2ab   : > { %v1886_v30 = vpop.eup %1885 }
 0x2ac   : > { %v1888_v31 = vpop.eup %1887  ;;  %729 = vperm.xlu1 %1866, %v1886_v30  }
 0x2ad   : > { %732 = vperm.xlu0 %1867, %v1888_v31   ;;  %v1890_v36 = vpop.eup %1889 }
 0x2ae   : > { %v1892_v39 = vpop.eup %1891 }
 0x2af   : > { %v1894_v41 = vpop.eup %1893 }
 0x2b0   : > { %735 = vperm.xlu1 %1866, %v1890_v36   ;;  %v1896_v16 = vpop.eup %1895 }
 0x2b1   : > { %v1898_v42 = vpop.eup %1897 }
 0x2b2   : > { %v1900_v43 = vpop.eup %1899 }
 0x2b4   : > { %738 = vperm.xlu1 %1866, %v1892_v39  }
 0x2b8   : > { %741 = vperm.xlu1 %1866, %v1894_v41  }
 0x2bc   : > { %744 = vperm.xlu1 %1866, %v1896_v16  }
 0x2c0   : > { %747 = vperm.xlu1 %1866, %v1898_v42  }
 0x2c4   : > { %750 = vperm.xlu1 %1866, %v1900_v43  }
 0x32b   : > { %v730_v44 = vpop.permute.xlu1 %729 }
 0x32c   : > { %v733_v48 = vpop.permute.xlu0 %732  ;;  %v755_v51 = vrot.slane %v730_v44, %v2377_v33 }
 0x32d   : > { %v759_v50 = vrot.slane %v733_v48, %v2377_v33 }
 0x32f   : > { %v736_v45 = vpop.permute.xlu1 %735  ;;  %v784_v56 = vsel %vm636_vm1, %v759_v50, %v755_v51 }
 0x330   : > { %v763_v52 = vrot.slane %v736_v45, %v2377_v33 }
 0x332   : > { %v785_v61 = vsel %vm638_vm2, %v763_v52, %v784_v56 }
 0x333   : > { %v739_v46 = vpop.permute.xlu1 %738 }
 0x334   : > { %v767_v53 = vrot.slane %v739_v46, %v2377_v33 }
 0x336   : > { %v786_v63 = vsel %vm640_vm3, %v767_v53, %v785_v61 }
 0x337   : > { %v742_v47 = vpop.permute.xlu1 %741 }
 0x338   : > { %v771_v54 = vrot.slane %v742_v47, %v2377_v33 }
 0x33a   : > { %v787_v1 = vsel %vm642_vm4, %v771_v54, %v786_v63 }
 0x33b   : > { %v745_v49 = vpop.permute.xlu1 %744 }
 0x33c   : > { %v775_v60 = vrot.slane %v745_v49, %v2377_v33 }
 0x33e   : > { %v788_v3 = vsel %vm644_vm5, %v775_v60, %v787_v1 }
 0x33f   : > { %v748_v55 = vpop.permute.xlu1 %747 }
 0x340   : > { %v779_v62 = vrot.slane %v748_v55, %v2377_v33 }
 0x342   : > { %v789_v6 = vsel %vm646_vm6, %v779_v62, %v788_v3 }
 0x343   : > { %v751_v2 = vpop.permute.xlu1 %750 }
 0x344   : > { %v783_v4 = vrot.slane %v751_v2, %v2377_v33 }
 0x346   : > { %v790_v14 = vsel %vm648_vm7, %v783_v4, %v789_v6 }
 0x347   : > { %v792_v17 = vsel %vm651_vm8, %v790_v14, 0.0 }
 0x348   : > { %793 = vadd.xlane.f32.xlu1 %v792_v17 }
 0x3d5   : > { %v794_v19 = vpop.xlane.xlu1 %793 }
 0x3d6   : > { %1901 = vrcp.f32 %v794_v19 }
 0x3e0   : > { %v1902_v20 = vpop.eup %1901 }
 0x3e1   : > { %v800_v22 = vrot.slane %v1902_v20, %v2354_v25  ;;  %v804_v24 = vrot.slane %v1902_v20, %v662_v57  ;;  %v808_v29 = vrot.slane %v1902_v20, %v666_v58  ;;  %v812_v57 = vrot.slane %v1902_v20, %v670_v59 }
 0x3e2   : > { %v816_v58 = vrot.slane %v1902_v20, %v674_v0  ;;  %v824_v32 = vrot.slane %v1902_v20, %v682_v21  ;;  %v828_v59 = vrot.slane %v1902_v20, %v686_v26 }
 0x3e3   : > { %v837_v23 = vmul.f32 %v1886_v30, %v800_v22  ;;  %v838_v28 = vmul.f32 %v1888_v31, %v804_v24  ;;  %v839_v25 = vmul.f32 %v1890_v36, %v808_v29  ;;  %v840_v30 = vmul.f32 %v1892_v39, %v812_v57 }
 0x3e4   : > { %v841_v5 = vmul.f32 %v1894_v41, %v816_v58  ;;  %v820_v31 = vrot.slane %v1902_v20, %v678_v15  ;;  %v843_v34 = vmul.f32 %v1898_v42, %v824_v32  ;;  %v844_v35 = vmul.f32 %v1900_v43, %v828_v59 }
 0x3e5   : > { %854 = vperm.xlu0 %1867, %v837_v23  }
 0x3e6   : > { %v842_v12 = vmul.f32 %v1896_v16, %v820_v31 }
 0x3e9   : > { %857 = vperm.xlu0 %1867, %v838_v28  }
 0x3ed   : > { %860 = vperm.xlu0 %1867, %v839_v25  }
 0x3f1   : > { %863 = vperm.xlu0 %1867, %v840_v30  }
 0x3f5   : > { %866 = vperm.xlu0 %1867, %v841_v5  }
 0x3f9   : > { %869 = vperm.xlu0 %1867, %v842_v12  }
 0x3fd   : > { %872 = vperm.xlu0 %1867, %v843_v34  }
 0x401   : > { %875 = vperm.xlu0 %1867, %v844_v35  }
 0x464   : > { %v855_v36 = vpop.permute.xlu0 %854 }
 0x465   : > { %v880_v0 = vrot.slane %v855_v36, %v2377_v33 }
 0x467   : > { %1753 = vmatmul.mubr.msk.f32.vlgmr.msra.gmra.mrb[0].mxu1 %vm651_vm8, %v880_v0 }
 0x468   : > { %v858_v37 = vpop.permute.xlu0 %857  ;;  %1756 = vmatpush3.msra.mxu1 %v2314_v7  ;;  %1757 = vmatprep.mubr.msk.f32.mxu1 %vm2075_vm9, %v2074_v27 }
 0x469   : > { %v884_v15 = vrot.slane %v858_v37, %v2377_v33  ;;  %1760 = vmatprep.subr.mxu1 %v2074_v27 }
 0x46b   : > { %1758 = vmatmul.mubr.msk.f32.vlgmr.msra.gmra.mrb[2].mxu1 %vm651_vm8, %v884_v15  ;;  %v909_v40 = vsel %vm636_vm1, %v884_v15, %v880_v0 }
 0x46c   : > { %v861_v18 = vpop.permute.xlu0 %860  ;;  %1761 = vmatpush3.msra.mxu1 %v2317_v8  ;;  %1762 = vmatprep.mubr.msk.f32.mxu1 %vm2075_vm9, %v2074_v27 }
 0x46d   : > { %v888_v21 = vrot.slane %v861_v18, %v2377_v33  ;;  %1765 = vmatprep.subr.mxu1 %v2074_v27 }
 0x46f   : > { %1763 = vmatmul.mubr.msk.f32.vlgmr.msra.gmra.mrb[4].mxu1 %vm651_vm8, %v888_v21  ;;  %v910_v41 = vsel %vm638_vm2, %v888_v21, %v909_v40 }
 0x470   : > { %v864_v7 = vpop.permute.xlu0 %863  ;;  %1766 = vmatpush3.msra.mxu1 %v2324_v9  ;;  %1767 = vmatprep.mubr.msk.f32.mxu1 %vm2075_vm9, %v2074_v27 }
 0x471   : > { %v892_v26 = vrot.slane %v864_v7, %v2377_v33  ;;  %1770 = vmatprep.subr.mxu1 %v2074_v27 }
 0x473   : > { %1768 = vmatmul.mubr.msk.f32.vlgmr.msra.gmra.mrb[6].mxu1 %vm651_vm8, %v892_v26  ;;  %v911_v16 = vsel %vm640_vm3, %v892_v26, %v910_v41 }
 0x474   : > { %v867_v8 = vpop.permute.xlu0 %866  ;;  %1771 = vmatpush3.msra.mxu1 %v2327_v10  ;;  %1772 = vmatprep.mubr.msk.f32.mxu1 %vm2075_vm9, %v2074_v27 }
 0x475   : > { %v896_v38 = vrot.slane %v867_v8, %v2377_v33  ;;  %1775 = vmatprep.subr.mxu1 %v2074_v27 }
 0x477   : > { %1773 = vmatmul.mubr.msk.f32.vlgmr.msra.gmra.mrb[8].mxu1 %vm651_vm8, %v896_v38  ;;  %v912_v42 = vsel %vm642_vm4, %v896_v38, %v911_v16 }
 0x478   : > { %v870_v9 = vpop.permute.xlu0 %869  ;;  %1776 = vmatpush3.msra.mxu1 %v2334_v11  ;;  %1777 = vmatprep.mubr.msk.f32.mxu1 %vm2075_vm9, %v2074_v27 }
 0x479   : > { %v900_v39 = vrot.slane %v870_v9, %v2377_v33  ;;  %1785 = vmatprep.subr.mxu1 %v2074_v27 }
 0x47b   : > { %1778 = vmatmul.mubr.msk.f32.vlgmr.msra.gmra.mrb[10].mxu1 %vm651_vm8, %v900_v39  ;;  %v913_v44 = vsel %vm644_vm5, %v900_v39, %v912_v42 }
 0x47c   : > { %v873_v10 = vpop.permute.xlu0 %872  ;;  %1786 = vmatpush3.msra.mxu1 %v2344_v13  ;;  %1787 = vmatprep.mubr.msk.f32.mxu1 %vm2075_vm9, %v2074_v27 }
 0x47d   : > { %v904_v11 = vrot.slane %v873_v10, %v2377_v33 }
 0x47f   : > { %1783 = vmatmul.mubr.msk.f32.vlgmr.msra.gmra.mrb[8].mxu0 %vm651_vm8, %v904_v11  ;;  %v914_v45 = vsel %vm646_vm6, %v904_v11, %v913_v44 }
 0x480   : > { %v876_v43 = vpop.permute.xlu0 %875 }
 0x481   : > { %v908_v13 = vrot.slane %v876_v43, %v2377_v33 }
 0x483   : > { %v915_v46 = vsel %vm648_vm7, %v908_v13, %v914_v45  ;;  %1788 = vmatmul.mubr.msk.f32.vlgmr.msra.gmra.mrb[12].mxu1 %vm651_vm8, %v908_v13 }
 0x484   : > { %917 = vst.msk [vmem:[%s305_s13] sm:$0xff] %vm651_vm8, %v915_v46 }
 0x53a   : > { %v986_v47 = vpop.f32.mrb[0].mxu1 }
 0x53b   : > { %v1754_v48 = vpop.f32.mrb[1].mxu1 }
 0x53e   : > { %v1058_v49 = vpop.f32.mrb[2].mxu1 }
 0x53f   : > { %v1502_v50 = vrot.slane %v1058_v49, 7  ;;  %v1759_v51 = vpop.f32.mrb[3].mxu1 }
 0x541   : > { %v1503_v52 = vsel %vm636_vm1, %v1502_v50, %v986_v47 }
 0x542   : > { %v1130_v53 = vpop.f32.mrb[4].mxu1 }
 0x543   : > { %v1504_v54 = vrot.slane %v1130_v53, 6  ;;  %v1764_v55 = vpop.f32.mrb[5].mxu1 }
 0x545   : > { %v1505_v33 = vsel %vm638_vm2, %v1504_v54, %v1503_v52 }
 0x546   : > { %v1202_v56 = vpop.f32.mrb[6].mxu1 }
 0x547   : > { %v1506_v60 = vrot.slane %v1202_v56, 5  ;;  %v1769_v61 = vpop.f32.mrb[7].mxu1 }
 0x549   : > { %v1507_v62 = vsel %vm640_vm3, %v1506_v60, %v1505_v33 }
 0x54a   : > { %v1274_v63 = vpop.f32.mrb[8].mxu1 }
 0x54b   : > { %v1508_v1 = vrot.slane %v1274_v63, 4  ;;  %v1774_v2 = vpop.f32.mrb[9].mxu1 }
 0x54d   : > { %v1509_v3 = vsel %vm642_vm4, %v1508_v1, %v1507_v62 }
 0x54e   : > { %v1346_v4 = vpop.f32.mrb[10].mxu1 }
 0x54f   : > { %v1510_v6 = vrot.slane %v1346_v4, 3  ;;  %v1779_v14 = vpop.f32.mrb[11].mxu1 }
 0x551   : > { %v1511_v17 = vsel %vm644_vm5, %v1510_v6, %v1509_v3 }
 0x552   : > { %v1418_v19 = vpop.f32.mrb[8].mxu0 }
 0x553   : > { %v1512_v20 = vrot.slane %v1418_v19, 2  ;;  %v1784_v22 = vpop.f32.mrb[9].mxu0 }
 0x555   : > { %v1513_v23 = vsel %vm646_vm6, %v1512_v20, %v1511_v17 }
 0x556   : > { %v1490_v24 = vpop.f32.mrb[12].mxu1 }
 0x557   : > { %v1514_v27 = vrot.slane %v1490_v24, 1  ;;  %v1789_v28 = vpop.f32.mrb[13].mxu1 }
 0x559   : > { %v1515_v29 = vsel %vm648_vm7, %v1514_v27, %v1513_v23 }
 0x55a   : > { %1517 = vst.msk [vmem:[%s294_s23] sm:$0xff] %vm318_vm0, %v1515_v29 }
 0x55b   : > { %2004 = shalt.err (!%p2001_p6)
}
 0x55c   : > { %s2005_s8 = scalar_lea.hbm %s2521_s6, 128  ;;  %s2009_s12 = scalar_lea.hbm %s2571_s4, 256 }
 0x55d   : > { %p2006_p8 = scmp.ne.s32.totalorder %s2521_s6, %s2005_s8  ;;  %p2010_p11 = scmp.lt.u32.totalorder %s2521_s6, %s2571_s4 }
 0x55e   : > { %p2011_p0 = scmp.lt.u32.totalorder %s2009_s12, %s2005_s8  ;;  %p2013_p13 = scmp.lt.u32.totalorder %s2005_s8, %s2521_s6 }
 0x55f   : > { %p2007_p4 = pnand %p2006_p8, %p2594_p3 }
 0x560   : > { %p2012_p10 = por %p2011_p0, %p2010_p11 }
 0x561   : > { %p2008_p12 = pneg %p2007_p4 }
 0x562   : > { %p2014_p7 = por %p2013_p13, %p2012_p10 }
 0x564   : > { %p2015_p9 = pnand %p2014_p7, %p2008_p12 }
 0x566   : > { %2018 = shalt.err (!%p2015_p9)
}
 0x567   : > { %1806 = dma.vmem_to_hbm [thread:$0]  (%p2594_p3), %s2523_s27, 128, %s2521_s6, %s1519_s22  }
 0x568 PF: > { %s1551_s29 = sand.u32 1, %s2053_s18   ;;  %p2595_p1 = scmp.ne.s32.totalorder %s2580_s25, 0 }
 0x569   : > { %p2596_p5 = scmp.ge.s32.totalorder %s2065_s21, 2  ;;  %s1552_s7 = scalar_lea.sflag [#allocation4], %s1551_s29 }
 0x56b   : > { %p1820_p2 = pnand %p2596_p5, %p2595_p1 }
 0x56d   : > { %2048 = dma.done.wait (!%p1820_p2), %s1552_s7, 128  }
 0x56e   : > { %2050 = vsyncadd (!%p1820_p2), %s1552_s7, 4294967168  ;;  %s2597_s13 = sld [smem:[#allocation13_spill]]  ;;  %p22_p6 = scmp.ge.s32.totalorder %s2163_s30, 4  }
 0x56f   : > { %s2598_s18 = smov %s2057_s19  ;;  %s2599_s19 = smov %s2061_s20 }
 0x570   : > { %s2601_s21 = smov %s2163_s30  ;;  %24 = sbr.rel (!%p22_p6) target bundleno = 10 (0xa), region = 110 }
 0x574   : > { %s2600_s20 = smov %s2597_s13 }
 0x577   :  { %1564 = vsyncpa [#allocation3], 1 }
 0x578   :  { %1566 = vsyncpa [#allocation3 + $0x1], 1 }
 0x579   :  { %1567 = vsyncpa [#allocation6], 1 }
 0x57a   :  { %1569 = vsyncpa [#allocation6 + $0x1], 1 }
 0x57b   :  { %1570 = vsyncpa [#allocation4], 1 }
 0x57c   :  { %1572 = vsyncpa [#allocation4 + $0x1], 1 }

</bundles_post_ra>
